<compile_context>
chip_gen: v6e
topology: v6e:2x2x1
jax: 0.10.0
libtpu: 0.0.40
codegen_flags: <defaults>
</compile_context>

<pallas_src>
import jax
import jax.numpy as jnp
from jax.experimental import pallas as pl
from jax.experimental.pallas import tpu as pltpu


def _round_up(x: int, m: int) -> int:
    return ((x + m - 1) // m) * m


def mlp_kernel(xT_ref, w1_ref, b1_ref, w2_ref, b2_ref, oT_ref):
    # xT: [d_in, TILE_B]   (batch on the 128-lane axis)
    # w1: [d_hid, d_in], b1: [d_hid, 1]   (VMEM-resident across the grid)
    # w2: [d_out, d_hid], b2: [d_out, 1]
    xT = xT_ref[...]

    # fc1 + bias + ReLU, transposed: h^T = W1 @ x^T + b1
    h = jnp.dot(w1_ref[...], xT, preferred_element_type=jnp.float32) + b1_ref[...]
    h = jnp.maximum(h, 0.0)                      # [d_hid, TILE_B]

    # fc2, transposed: y^T = W2 @ h^T + b2
    y = jnp.dot(w2_ref[...], h, preferred_element_type=jnp.float32) + b2_ref[...]

    oT_ref[...] = y.astype(oT_ref.dtype)         # lane-dense store, masked only at boundary


def mlp_forward(x, w1, b1, w2, b2, *, tile_b: int = 4096):
    """x: [B, d_in] f32.  Torch-layout params: w1 [d_hid, d_in], b1 [d_hid],
    w2 [d_out, d_hid], b2 [d_out].  Returns [B, d_out] f32."""
    B, d_in = x.shape
    d_hid = w1.shape[0]
    d_out = w2.shape[0]

    # Feature-major views: batch on the lane axis everywhere inside the kernel.
    xT = x.T                                     # [d_in, B]
    b1c = b1.reshape(d_hid, 1)
    b2c = b2.reshape(d_out, 1)

    # Batch tile on the lane axis: multiple of 128, as large as is useful.
    tile_b = max(128, min(tile_b, _round_up(B, 128)))
    tile_b = _round_up(tile_b, 128)
    grid_b = pl.cdiv(B, tile_b)                  # partial boundary block is masked by Pallas

    cost = pl.CostEstimate(
        flops=2 * B * (d_in * d_hid + d_hid * d_out),
        transcendentals=0,
        bytes_accessed=4 * (B * (d_in + d_out)
                            + d_in * d_hid + d_hid * d_out + d_hid + d_out),
    )

    yT = pl.pallas_call(
        mlp_kernel,
        out_shape=jax.ShapeDtypeStruct((d_out, B), jnp.float32),
        grid=(grid_b,),
        in_specs=[
            pl.BlockSpec((d_in, tile_b), lambda i: (0, i)),    # x tile: batch on lanes
            pl.BlockSpec((d_hid, d_in), lambda i: (0, 0)),     # params: resident in VMEM
            pl.BlockSpec((d_hid, 1), lambda i: (0, 0)),
            pl.BlockSpec((d_out, d_hid), lambda i: (0, 0)),
            pl.BlockSpec((d_out, 1), lambda i: (0, 0)),
        ],
        out_specs=pl.BlockSpec((d_out, tile_b), lambda i: (0, i)),
        compiler_params=pltpu.CompilerParams(
            # Split across v7x TensorCores only when there is >1 tile of work.
            dimension_semantics=("parallel",) if grid_b > 1 else ("arbitrary",),
            vmem_limit_bytes=32 * 1024 * 1024,
        ),
        cost_estimate=cost,
    )(xT, w1, b1c, w2, b2c)

    # TODO(synk): keep the downstream consumer in the transposed [d_out, B]
    # layout (and feed x feature-major) so neither transpose pass hits HBM.
    return yT.T


if __name__ == "__main__":
    key = jax.random.PRNGKey(0)
    k_x, k_w1, k_b1, k_w2, k_b2 = jax.random.split(key, 5)

    B, D_IN, D_HID, D_OUT = 256, 4, 16, 2

    # Deterministic inputs / params (mimics torch's uniform(-1/sqrt(fan_in), ...)),
    # in torch layout: weight is [out_features, in_features].
    x = jax.random.normal(k_x, (B, D_IN), dtype=jnp.float32)
    lim1 = 1.0 / (D_IN ** 0.5)
    w1 = jax.random.uniform(k_w1, (D_HID, D_IN), jnp.float32, -lim1, lim1)
    b1 = jax.random.uniform(k_b1, (D_HID,), jnp.float32, -lim1, lim1)
    lim2 = 1.0 / (D_HID ** 0.5)
    w2 = jax.random.uniform(k_w2, (D_OUT, D_HID), jnp.float32, -lim2, lim2)
    b2 = jax.random.uniform(k_b2, (D_OUT,), jnp.float32, -lim2, lim2)

    out = mlp_forward(x, w1, b1, w2, b2)
    jax.block_until_ready(out)

    # Reference check in plain JAX (torch semantics: x @ W^T + b).
    ref = jnp.maximum(x @ w1.T + b1[None, :], 0.0) @ w2.T + b2[None, :]
    assert out.shape == (B, D_OUT)
    assert jnp.allclose(out, ref, atol=1e-5, rtol=1e-5)

    # Batch not a multiple of 128 -> exercises the masked partial-block path.
    out_small = mlp_forward(x[:13], w1, b1, w2, b2)
    jax.block_until_ready(out_small)
    assert jnp.allclose(out_small, ref[:13], atol=1e-5, rtol=1e-5)

    print("KERNEL_OK")
</pallas_src>

<mosaic_0001>
module attributes {stable_mosaic.version = 11 : i64} {
  func.func @mlp_kernel(%arg0: i32, %arg1: memref<4x256xf32, #tpu.memory_space<vmem>>, %arg2: memref<16x4xf32, #tpu.memory_space<vmem>>, %arg3: memref<16x1xf32, #tpu.memory_space<vmem>>, %arg4: memref<2x16xf32, #tpu.memory_space<vmem>>, %arg5: memref<2x1xf32, #tpu.memory_space<vmem>>, %arg6: memref<2x256xf32, #tpu.memory_space<vmem>>) attributes {dimension_semantics = [#tpu.dimension_semantics<arbitrary>], iteration_bounds = array<i64: 1>, scalar_prefetch = 0 : i64, scratch_operands = 0 : i64, tpu.core_type = #tpu.core_type<tc>, window_params = [{transform_indices = @transform_0, window_bounds = array<i64: 4, 256>}, {pipeline_mode = #tpu.pipeline_mode<synchronous>, transform_indices = @transform_1, window_bounds = array<i64: 16, 4>}, {pipeline_mode = #tpu.pipeline_mode<synchronous>, transform_indices = @transform_2, window_bounds = array<i64: 16, 1>}, {pipeline_mode = #tpu.pipeline_mode<synchronous>, transform_indices = @transform_3, window_bounds = array<i64: 2, 16>}, {pipeline_mode = #tpu.pipeline_mode<synchronous>, transform_indices = @transform_4, window_bounds = array<i64: 2, 1>}, {transform_indices = @transform_5, window_bounds = array<i64: 2, 256>}]} {
    %c0 = arith.constant 0 : index
    %c0_0 = arith.constant 0 : index
    %0 = vector.load %arg1[%c0, %c0_0] : memref<4x256xf32, #tpu.memory_space<vmem>>, vector<4x256xf32>
    %c0_1 = arith.constant 0 : index
    %c0_2 = arith.constant 0 : index
    %1 = vector.load %arg2[%c0_1, %c0_2] : memref<16x4xf32, #tpu.memory_space<vmem>>, vector<16x4xf32>
    %cst = arith.constant dense<0.000000e+00> : vector<16x256xf32>
    %2 = tpu.matmul %1, %0, %cst {dimension_numbers = #tpu.dot_dimension_numbers<[1], [0], [0], [1], [0, 0, 1, 1], [], []>} : vector<16x4xf32>, vector<4x256xf32>, vector<16x256xf32> -> vector<16x256xf32>
    %c0_3 = arith.constant 0 : index
    %c0_4 = arith.constant 0 : index
    %3 = vector.load %arg3[%c0_3, %c0_4] : memref<16x1xf32, #tpu.memory_space<vmem>>, vector<16x1xf32>
    %4 = vector.broadcast %3 : vector<16x1xf32> to vector<16x256xf32>
    %5 = arith.addf %2, %4 : vector<16x256xf32>
    %cst_5 = arith.constant 0.000000e+00 : f32
    %6 = vector.broadcast %cst_5 : f32 to vector<16x256xf32>
    %7 = arith.maximumf %5, %6 : vector<16x256xf32>
    %c0_6 = arith.constant 0 : index
    %c0_7 = arith.constant 0 : index
    %8 = vector.load %arg4[%c0_6, %c0_7] : memref<2x16xf32, #tpu.memory_space<vmem>>, vector<2x16xf32>
    %cst_8 = arith.constant dense<0.000000e+00> : vector<2x256xf32>
    %9 = tpu.matmul %8, %7, %cst_8 {dimension_numbers = #tpu.dot_dimension_numbers<[1], [0], [0], [1], [0, 0, 1, 1], [], []>} : vector<2x16xf32>, vector<16x256xf32>, vector<2x256xf32> -> vector<2x256xf32>
    %c0_9 = arith.constant 0 : index
    %c0_10 = arith.constant 0 : index
    %10 = vector.load %arg5[%c0_9, %c0_10] : memref<2x1xf32, #tpu.memory_space<vmem>>, vector<2x1xf32>
    %11 = vector.broadcast %10 : vector<2x1xf32> to vector<2x256xf32>
    %12 = arith.addf %9, %11 : vector<2x256xf32>
    %c0_11 = arith.constant 0 : index
    %c0_12 = arith.constant 0 : index
    %13 = vector.load %arg6[%c0_11, %c0_12] : memref<2x256xf32, #tpu.memory_space<vmem>>, vector<2x256xf32>
    tpu.vector_store %arg6[%c0_11, %c0_12], %12 {strides = array<i32>} : memref<2x256xf32, #tpu.memory_space<vmem>>, vector<2x256xf32>,
    return
  }
  func.func @transform_0(%arg0: i32) -> (i32, i32) {
    %c0_i32 = arith.constant 0 : i32
    %c0_i32_0 = arith.constant 0 : i32
    return %c0_i32, %arg0 : i32, i32
  }
  func.func @transform_1(%arg0: i32) -> (i32, i32) {
    %c0_i32 = arith.constant 0 : i32
    %c0_i32_0 = arith.constant 0 : i32
    %c0_i32_1 = arith.constant 0 : i32
    return %c0_i32, %c0_i32_0 : i32, i32
  }
  func.func @transform_2(%arg0: i32) -> (i32, i32) {
    %c0_i32 = arith.constant 0 : i32
    %c0_i32_0 = arith.constant 0 : i32
    %c0_i32_1 = arith.constant 0 : i32
    return %c0_i32, %c0_i32_0 : i32, i32
  }
  func.func @transform_3(%arg0: i32) -> (i32, i32) {
    %c0_i32 = arith.constant 0 : i32
    %c0_i32_0 = arith.constant 0 : i32
    %c0_i32_1 = arith.constant 0 : i32
    return %c0_i32, %c0_i32_0 : i32, i32
  }
  func.func @transform_4(%arg0: i32) -> (i32, i32) {
    %c0_i32 = arith.constant 0 : i32
    %c0_i32_0 = arith.constant 0 : i32
    %c0_i32_1 = arith.constant 0 : i32
    return %c0_i32, %c0_i32_0 : i32, i32
  }
  func.func @transform_5(%arg0: i32) -> (i32, i32) {
    %c0_i32 = arith.constant 0 : i32
    %c0_i32_0 = arith.constant 0 : i32
    return %c0_i32, %arg0 : i32, i32
  }
}

</mosaic_0001>

<bundles_post_ra>
// kernel: tpu_custom_call.1
= control target key start
LH: loop header
LB: loop body
LE: loop exit
PB: predicated region body
PF: predicated region fallthrough
CT: control target
= control target key end

     0   :  { %vm45_vm0 = vcmask 1043456   ;;  %v273_v2 = vmov 0.0   ;;  %s330_s0 = inlined_call_operand.vmem [shape: f32[4,256], index: 0, kind: input, shape index: {}]   ;;  %s331_s1 = inlined_call_operand.vmem [shape: f32[16,4], index: 1, kind: input, shape index: {}]   ;;  %s332_s2 = inlined_call_operand.vmem [shape: f32[16,1], index: 2, kind: input, shape index: {}]   ;;  %s333_s3 = inlined_call_operand.vmem [shape: f32[2,16], index: 3, kind: input, shape index: {}]   ;;  %s334_s4 = inlined_call_operand.vmem [shape: f32[2,1], index: 4, kind: input, shape index: {}]   ;;  %s335_s5 = inlined_call_operand.hbm [shape: f32[2,256], index: 5, kind: output, shape index: {}]  }
   0x1   :  { %v21_v0 = vld [vmem:[%s330_s0] sm:$0xff]  ;;  %114 = vmatprep.mubr.f32.mxu0 %v273_v2  ;;  %v25_v3 = vld [vmem:[%s332_s2 + $0x8] sm:$0xff]  ;;  %206 = vmatprep.mubr.f32.mxu1 %v273_v2 }
   0x2   :  { %v37_v1 = vcombine.high %v21_v0, %v21_v0 }
   0x3   :  { %10 = vsyncpa [#allocation3], 0  ;;  %v22_v4 = vld [vmem:[%s331_s1] sm:$0xff]  ;;  %vm38_vm1 = vcmask 31744   ;;  %v274_v5 = vmov 0   ;;  %v23_v7 = vld [vmem:[%s331_s1 + $0x8] sm:$0xff] }
   0x4   :  { %248 = vset.pattern.permute.xlu0 %v274_v5  ;;  %249 = vset.pattern.permute.xlu1 %v274_v5  ;;  %v24_v6 = vld [vmem:[%s332_s2] sm:$0xff]  ;;  %vm138_vm2 = vcmask 130048  }
   0x5   :  { %239 = vmatprep.subr.msk.mxu0 %vm45_vm0, %v37_v1  ;;  %33 = vperm.xlu0 %248, %v25_v3   ;;  %v132_v8 = vld [vmem:[%s334_s4] sm:$0x3]  ;;  %s275_s4 = smov [#allocation2]  }
   0x6   :  { %240 = vmatpush1.msk.msra.mxu0 %vm45_vm0, %v21_v0  ;;  %135 = vperm.xlu1 %249, %v132_v8   ;;  %v131_v23 = vld [vmem:[%s333_s3] sm:$0x3]  ;;  %s231_s29 = sshll.u32 %s275_s4, 4  ;;  %s232_s29 = int_to_ptr.vmem [resolvable:$true] %s231_s29 }
   0x7   :  { %241 = vmatmul.mubr.msk.f32.vlgmr.msra.gmra.mxu0 %vm38_vm1, %v22_v4  ;;  %s251_s30 = scalar_lea.vmem %s232_s29, 64  ;;  %p256_p1 = scmp.lt.s32.totalorder %s232_s29, %s232_s29 }
   0x8   :  { %120 = vmatprep.mubr.f32.mxu0 %v273_v2  ;;  %p252_p0 = scmp.ne.s32.totalorder %s232_s29, %s251_s30  ;;  %p257_p2 = scmp.lt.s32.totalorder %s251_s30, %s251_s30 }
   0x9   :  { %28 = vperm.xlu0 %248, %v24_v6  }
   0xa   :  { %p258_p3 = por %p257_p2, %p256_p1 }
   0xb   :  { %242 = vmatmul.mubr.msk.f32.gmra.mxu0 %vm38_vm1, %v23_v7 }
   0xc   :  { %p259_p4 = pnand %p258_p3, %p252_p0 }
  0x80   :  { %v34_v9 = vpop.permute.xlu0 %33 }
  0x81   :  { %v136_v24 = vpop.permute.xlu1 %135 }
  0x84   :  { %v29_v13 = vpop.permute.xlu0 %28 }
  0xc7   :  { %v116_v10 = vpop.f32.mrf.mxu0 }
  0xc8   :  { %v117_v18 = vadd.f32 %v116_v10, %v29_v13 }
  0xc9   :  { %v118_v11 = vpop.f32.mrf.mxu0 }
  0xca   :  { %v119_v16 = vadd.f32 %v118_v11, %v29_v13  ;;  %v127_v22 = vmax.f32 %v117_v18, 0.0 }
  0xcb   :  { %v122_v12 = vpop.f32.mrf.mxu0 }
  0xcc   :  { %v123_v14 = vadd.f32 %v122_v12, %v34_v9  ;;  %v128_v21 = vmax.f32 %v119_v16, 0.0 }
  0xcd   :  { %v124_v15 = vpop.f32.mrf.mxu0 }
  0xce   :  { %v125_v17 = vadd.f32 %v124_v15, %v34_v9  ;;  %v129_v20 = vmax.f32 %v123_v14, 0.0 }
  0xd0   :  { %v130_v19 = vmax.f32 %v125_v17, 0.0 }
  0xd2   :  { %170 = vmatprep.subr.mxu1 %v130_v19 }
  0xd3   :  { %171 = vmatpush1.msra.mxu1 %v129_v20 }
  0xd4   :  { %172 = vmatprep.subr.mxu1 %v128_v21 }
  0xd5   :  { %173 = vmatpush1.msra.mxu1 %v127_v22 }
  0xd6   :  { %243 = vmatmul.mubr.msk.f32.vlgmr.msra.gmra.mxu1 %vm138_vm2, %v131_v23 }
 0x196   :  { %v208_v25 = vpop.f32.mrf.mxu1 }
 0x197   :  { %v209_v27 = vadd.f32 %v208_v25, %v136_v24 }
 0x198   :  { %v210_v26 = vpop.f32.mrf.mxu1 }
 0x199   :  { %v211_v28 = vadd.f32 %v210_v26, %v136_v24 }
 0x19b   :  { %v215_v29 = vcombine.low %v209_v27, %v211_v28 }
 0x19d   :  { %244 = vst.sshfl [vmem:[#allocation2] sm:$0x33 pattern:$0x76325410] %v215_v29 }
 0x19e   :  { %262 = shalt.err (!%p259_p4)
}
 0x19f   :  { %234 = dma.vmem_to_hbm [thread:$0]  %s232_s29, 64, %s335_s5, [#allocation3]  }
 0x1a0   :  { %271 = dma.done.wait [#allocation3], 64  }
 0x1a1   :  { %272 = vsyncadd [#allocation3], 4294967232 }
 0x1a2   :  { %238 = vsyncpa [#allocation3], 1 }

</bundles_post_ra>
